<compile_context>
chip_gen: v6e
topology: v6e:2x2x1
jax: 0.10.0
libtpu: 0.0.40
codegen_flags: <defaults>
</compile_context>

<pallas_src>
import jax
import jax.numpy as jnp
from jax.experimental import pallas as pl
from jax.experimental.pallas import tpu as pltpu


# ---------------------------------------------------------------------------
# Shared elementwise math (pure VPU/EUP work)
# ---------------------------------------------------------------------------
def _nlayer_math(x):
    """Return (func(x), log|der(x)|) elementwise."""
    ax = jnp.abs(x)
    outer_sel = ax > 1.0                       # |x| > 1  -> outer branch
    g = 0.99 * x * x + 0.01                    # shared polynomial, >= 0.01
    # outer func: sign(x)*(|x| - 2/3) == x - sign(x)*2/3  (|x| > 1 so x != 0)
    outer = x - jnp.where(x > 0, 2.0 / 3.0, -2.0 / 3.0)
    middle = x * g * (1.0 / 3.0)               # == 0.99*x^3/3 + 0.01*x/3
    y = jnp.where(outer_sel, outer, middle)
    # der = 1 on the outer branch (log -> 0); der = g > 0 inside -> log(g).
    ld = jnp.where(outer_sel, 0.0, jnp.log(g))
    return y, ld


def _fold_to_lanes(t):
    """(tb, tn) -> (tb, 128) by summing the vreg-aligned 128-lane tiles.

    Pure elementwise VPU adds on aligned lane slices; no cross-lane (XLU)
    reduce and no relayout.  Requires tn % 128 == 0.
    """
    _, tn = t.shape
    acc = t[:, 0:128]
    for c in range(1, tn // 128):
        acc = acc + t[:, c * 128:(c + 1) * 128]
    return acc


# ---------------------------------------------------------------------------
# Kernels
# ---------------------------------------------------------------------------
def nlayer_kernel_fullwidth(x_ref, y_ref, ld_ref):
    """1-D grid over row tiles; the whole feature axis is in one block."""
    x = x_ref[...].astype(jnp.float32)         # (tb, N)
    y, ld_term = _nlayer_math(x)
    y_ref[...] = y.astype(y_ref.dtype)
    # One cross-lane reduce per row tile; kernel is HBM-bound so XLU has slack.
    ld_ref[...] = jnp.sum(ld_term, axis=1, keepdims=True).astype(ld_ref.dtype)


def nlayer_kernel_tiled(x_ref, y_ref, ld_ref, acc_ref):
    """2-D grid (rows, features); feature (reduction) axis last, 'arbitrary'."""
    j = pl.program_id(1)

    @pl.when(j == 0)
    def _():
        acc_ref[...] = jnp.zeros_like(acc_ref)

    x = x_ref[...].astype(jnp.float32)         # (tb, tn)
    y, ld_term = _nlayer_math(x)
    y_ref[...] = y.astype(y_ref.dtype)

    # Lane-dense f32 accumulation: only aligned VPU adds in the hot loop.
    acc_ref[...] += _fold_to_lanes(ld_term)

    @pl.when(j == pl.num_programs(1) - 1)
    def _():
        # Single cross-lane reduce + single 1-lane-wide store per row tile.
        ld_ref[...] = jnp.sum(acc_ref[...], axis=1,
                              keepdims=True).astype(ld_ref.dtype)


# ---------------------------------------------------------------------------
# Tile selection (generation-aware)
# ---------------------------------------------------------------------------
def _chip_config():
    """Returns (per_buffer_budget_bytes, vmem_limit_bytes_or_None, vmem_cap)."""
    try:
        kind = jax.devices()[0].device_kind.lower()
    except Exception:
        kind = ""
    if "v7" in kind:
        # 64 MiB physical VMEM / 32 MiB default scoped; 3.2 TB/s HBM.
        return 4 << 20, None, 56 << 20
    if "v6" in kind:
        # 128 MiB physical; push blocks toward the ~85% roofline knee.
        return 6 << 20, 64 << 20, 100 << 20
    if any(v in kind for v in ("v2", "v3", "v4", "v5")):
        # v5e & older: 16 MiB default scoped VMEM; roofline saturates ~2 MiB.
        return 2 << 20, None, 100 << 20
    # Unknown generation: conservative (v7x-like) settings.
    return 4 << 20, None, 56 << 20


def _largest_divisor(dim, cap, multiple):
    """Largest t <= cap with dim % t == 0 and (t % multiple == 0 or t == dim)."""
    cap = min(cap, dim)
    for t in range(cap, 0, -1):
        if dim % t == 0 and (t % multiple == 0 or t == dim):
            return t
    return dim  # fall back to the full dim (always legal for BlockSpec)


def _pick_tb(batch, row_cap, sub_mult):
    tb = _largest_divisor(batch, row_cap, sub_mult)
    # Prefer >= 2 row tiles so the "parallel" batch axis can be sharded across
    # both TensorCores on v7x (one extra grid step elsewhere is negligible).
    if tb == batch and batch >= 2 * sub_mult:
        tb2 = _largest_divisor(batch, batch // 2, sub_mult)
        if tb2 % sub_mult == 0:
            tb = tb2
    return tb


# ---------------------------------------------------------------------------
# Wrapper
# ---------------------------------------------------------------------------
def nlayer_forward(x, *, tb=None, tn=None):
    """x: (B, N) float -> (func(x) of shape (B, N), logdet of shape (B,) f32)."""
    B, N = x.shape
    itemsize = jnp.dtype(x.dtype).itemsize
    sub_mult = max(8, 32 // itemsize)          # (8,128) f32 / (16,128) bf16
    budget, vmem_limit, vmem_cap = _chip_config()

    if tn is None:
        # Full-width blocks whenever the smallest legal row tile fits the
        # per-buffer budget (or feature tiling is impossible, N % 128 != 0).
        if sub_mult * N * itemsize <= budget or N % 128 != 0:
            tn = N
        else:
            lane_cap = max(128, (budget // (sub_mult * itemsize)) // 128 * 128)
            tn = _largest_divisor(N, lane_cap, 128)
    if tb is None:
        row_cap = max(sub_mult, budget // (tn * itemsize))
        tb = _pick_tb(B, row_cap, sub_mult)

    assert B % tb == 0 and N % tn == 0

    # Make sure the double-buffered 2x(in)+2x(out) footprint is admitted.
    if vmem_limit is None:
        footprint = 4 * tb * tn * itemsize + (2 << 20)
        if footprint > (14 << 20):             # would not fit v5e's 16 MiB default
            vmem_limit = max(32 << 20, footprint)
    if vmem_limit is not None:
        vmem_limit = min(vmem_limit, vmem_cap)

    full_width = (tn == N)
    if full_width:
        grid = (B // tb,)
        kernel = nlayer_kernel_fullwidth
        in_specs = [pl.BlockSpec((tb, N), lambda i: (i, 0))]
        out_specs = [
            pl.BlockSpec((tb, N), lambda i: (i, 0)),
            pl.BlockSpec((tb, 1), lambda i: (i, 0)),
        ]
        scratch_shapes = []
        dim_sem = ("parallel",)
    else:
        assert tn % 128 == 0, "feature-tiled path needs tn to be a multiple of 128"
        grid = (B // tb, N // tn)              # reduction (feature) axis last
        kernel = nlayer_kernel_tiled
        in_specs = [pl.BlockSpec((tb, tn), lambda i, j: (i, j))]
        out_specs = [
            pl.BlockSpec((tb, tn), lambda i, j: (i, j)),
            # Constant block index across j -> VMEM-resident; HBM writeback
            # only once per row tile.
            pl.BlockSpec((tb, 1), lambda i, j: (i, 0)),
        ]
        scratch_shapes = [pltpu.VMEM((tb, 128), jnp.float32)]
        dim_sem = ("parallel", "arbitrary")

    y, ld = pl.pallas_call(
        kernel,
        out_shape=(
            jax.ShapeDtypeStruct((B, N), x.dtype),
            jax.ShapeDtypeStruct((B, 1), jnp.float32),   # f32 log-det always
        ),
        grid_spec=pltpu.PrefetchScalarGridSpec(
            num_scalar_prefetch=0,
            grid=grid,
            in_specs=in_specs,
            out_specs=out_specs,
            scratch_shapes=scratch_shapes,
        ),
        compiler_params=pltpu.CompilerParams(
            dimension_semantics=dim_sem,
            vmem_limit_bytes=vmem_limit,
        ),
    )(x)
    return y, ld.reshape(B)


# ---------------------------------------------------------------------------
# Pure-JAX reference (mirrors the PyTorch module exactly, sign-blend and all)
# ---------------------------------------------------------------------------
def _el_select_ref(a, b, p):
    s = (jnp.sign(p) + 1.0) / 2.0
    return a * s + b * (1.0 - s)


def nlayer_forward_ref(x):
    p = jnp.abs(x) - 1.0
    der = _el_select_ref(jnp.ones_like(x), 0.99 * x * x + 0.01, p)
    y = _el_select_ref(
        jnp.sign(x) * (jnp.abs(x) - 2.0 / 3.0),
        0.99 * (x ** 3) / 3.0 + 0.01 * x / 3.0,
        p,
    )
    return y, jnp.sum(jnp.log(jnp.abs(der)), axis=1)


if __name__ == "__main__":
    key = jax.random.PRNGKey(0)

    # nLayer has no learnable parameters; inputs are (batch, n).
    # Case 1: single full-width block (1-D grid, one step).
    B, N = 8, 128
    x = jax.random.normal(key, (B, N), dtype=jnp.float32) * 1.5  # hit both branches
    y, ld = nlayer_forward(x)
    y = jax.block_until_ready(y)
    ld = jax.block_until_ready(ld)
    y_ref, ld_ref = nlayer_forward_ref(x)
    assert y.shape == (B, N) and ld.shape == (B,)
    assert jnp.allclose(y, y_ref, atol=1e-5, rtol=1e-5)
    assert jnp.allclose(ld, ld_ref, atol=1e-4, rtol=1e-4)

    # Case 2: full-width path with multiple row tiles (exercises the >=2 row
    # tile preference used for v7x megacore sharding).
    k2 = jax.random.split(key)[0]
    x2 = jax.random.normal(k2, (32, 512), dtype=jnp.float32) * 1.5
    y2, ld2 = nlayer_forward(x2)
    y2 = jax.block_until_ready(y2)
    ld2 = jax.block_until_ready(ld2)
    y2_ref, ld2_ref = nlayer_forward_ref(x2)
    assert jnp.allclose(y2, y2_ref, atol=1e-5, rtol=1e-5)
    assert jnp.allclose(ld2, ld2_ref, atol=1e-4, rtol=1e-4)

    # Case 3: forced feature-tiled fallback (2-D grid + lane-dense f32 scratch
    # accumulator, finalize under pl.when(j == last)).
    k3 = jax.random.split(key, 3)[2]
    x3 = jax.random.normal(k3, (16, 256), dtype=jnp.float32) * 1.5
    y3, ld3 = nlayer_forward(x3, tb=8, tn=128)
    y3 = jax.block_until_ready(y3)
    ld3 = jax.block_until_ready(ld3)
    y3_ref, ld3_ref = nlayer_forward_ref(x3)
    assert jnp.allclose(y3, y3_ref, atol=1e-5, rtol=1e-5)
    assert jnp.allclose(ld3, ld3_ref, atol=1e-4, rtol=1e-4)

    print("KERNEL_OK")
</pallas_src>

<mosaic_0001>
module attributes {stable_mosaic.version = 11 : i64} {
  func.func @nlayer_kernel_fullwidth(%arg0: i32, %arg1: memref<8x128xf32, #tpu.memory_space<vmem>>, %arg2: memref<8x128xf32, #tpu.memory_space<vmem>>, %arg3: memref<8x1xf32, #tpu.memory_space<vmem>>) attributes {dimension_semantics = [#tpu.dimension_semantics<parallel>], iteration_bounds = array<i64: 1>, scalar_prefetch = 0 : i64, scratch_operands = 0 : i64, tpu.core_type = #tpu.core_type<tc>, window_params = [{transform_indices = @transform_0, window_bounds = array<i64: 8, 128>}, {transform_indices = @transform_1, window_bounds = array<i64: 8, 128>}, {transform_indices = @transform_2, window_bounds = array<i64: 8, 1>}]} {
    %c0 = arith.constant 0 : index
    %c0_0 = arith.constant 0 : index
    %0 = vector.load %arg1[%c0, %c0_0] : memref<8x128xf32, #tpu.memory_space<vmem>>, vector<8x128xf32>
    %1 = math.absf %0 : vector<8x128xf32>
    %cst = arith.constant 1.000000e+00 : f32
    %2 = vector.broadcast %cst : f32 to vector<8x128xf32>
    %3 = arith.cmpf ogt, %1, %2 : vector<8x128xf32>
    %cst_1 = arith.constant 9.900000e-01 : f32
    %4 = vector.broadcast %cst_1 : f32 to vector<8x128xf32>
    %5 = arith.mulf %4, %0 : vector<8x128xf32>
    %6 = arith.mulf %5, %0 : vector<8x128xf32>
    %cst_2 = arith.constant 0.00999999977 : f32
    %7 = vector.broadcast %cst_2 : f32 to vector<8x128xf32>
    %8 = arith.addf %6, %7 : vector<8x128xf32>
    %cst_3 = arith.constant 0.000000e+00 : f32
    %9 = vector.broadcast %cst_3 : f32 to vector<8x128xf32>
    %10 = arith.cmpf ogt, %0, %9 : vector<8x128xf32>
    %cst_4 = arith.constant 0.666666686 : f32
    %cst_5 = arith.constant -0.666666686 : f32
    %11 = vector.broadcast %cst_4 : f32 to vector<8x128xf32>
    %12 = vector.broadcast %cst_5 : f32 to vector<8x128xf32>
    %13 = arith.select %10, %11, %12 : vector<8x128xi1>, vector<8x128xf32>
    %14 = arith.subf %0, %13 : vector<8x128xf32>
    %15 = arith.mulf %0, %8 : vector<8x128xf32>
    %cst_6 = arith.constant 0.333333343 : f32
    %16 = vector.broadcast %cst_6 : f32 to vector<8x128xf32>
    %17 = arith.mulf %15, %16 : vector<8x128xf32>
    %18 = arith.select %3, %14, %17 : vector<8x128xi1>, vector<8x128xf32>
    %19 = math.log %8 : vector<8x128xf32>
    %cst_7 = arith.constant 0.000000e+00 : f32
    %20 = vector.broadcast %cst_7 : f32 to vector<8x128xf32>
    %21 = arith.select %3, %20, %19 : vector<8x128xi1>, vector<8x128xf32>
    %c0_8 = arith.constant 0 : index
    %c0_9 = arith.constant 0 : index
    %22 = vector.load %arg2[%c0_8, %c0_9] : memref<8x128xf32, #tpu.memory_space<vmem>>, vector<8x128xf32>
    tpu.vector_store %arg2[%c0_8, %c0_9], %18 {strides = array<i32>} : memref<8x128xf32, #tpu.memory_space<vmem>>, vector<8x128xf32>,
    %cst_10 = arith.constant dense<0.000000e+00> : vector<8xf32>
    %23 = vector.multi_reduction <add>, %21, %cst_10 [1] : vector<8x128xf32> to vector<8xf32>
    %24 = vector.shape_cast %23 : vector<8xf32> to vector<8x1xf32>
    %c0_11 = arith.constant 0 : index
    %c0_12 = arith.constant 0 : index
    %25 = vector.load %arg3[%c0_11, %c0_12] : memref<8x1xf32, #tpu.memory_space<vmem>>, vector<8x1xf32>
    tpu.vector_store %arg3[%c0_11, %c0_12], %24 {strides = array<i32>} : memref<8x1xf32, #tpu.memory_space<vmem>>, vector<8x1xf32>,
    return
  }
  func.func @transform_0(%arg0: i32) -> (i32, i32) {
    %c0_i32 = arith.constant 0 : i32
    %c0_i32_0 = arith.constant 0 : i32
    return %arg0, %c0_i32 : i32, i32
  }
  func.func @transform_1(%arg0: i32) -> (i32, i32) {
    %c0_i32 = arith.constant 0 : i32
    %c0_i32_0 = arith.constant 0 : i32
    return %arg0, %c0_i32 : i32, i32
  }
  func.func @transform_2(%arg0: i32) -> (i32, i32) {
    %c0_i32 = arith.constant 0 : i32
    %c0_i32_0 = arith.constant 0 : i32
    return %arg0, %c0_i32 : i32, i32
  }
}

</mosaic_0001>

<bundles_post_ra>
// kernel: tpu_custom_call.1
= control target key start
LH: loop header
LB: loop body
LE: loop exit
PB: predicated region body
PF: predicated region fallthrough
CT: control target
= control target key end

     0   :  { %8 = vsyncpa [#allocation3], 0  ;;  %s138_s0 = inlined_call_operand.hbm [shape: f32[8,128], index: 0, kind: input, shape index: {}]   ;;  %s139_s1 = inlined_call_operand.hbm [shape: f32[8,128], index: 1, kind: output, shape index: {0}]   ;;  %s140_s2 = inlined_call_operand.vmem [shape: f32[8,1], index: 2, kind: output, shape index: {1}]  }
   0x1   :  { %9 = vsyncpa [#allocation4], 0  ;;  %s111_s9 = smov [#allocation2]  }
   0x2   :  { %s16_s10 = sshll.u32 %s111_s9, 4  ;;  %s17_s10 = int_to_ptr.vmem [resolvable:$true] %s16_s10 }
   0x3   :  { %s75_s11 = scalar_lea.vmem %s17_s10, 128  ;;  %p80_p1 = scmp.lt.s32.totalorder %s17_s10, %s17_s10 }
   0x4   :  { %p76_p0 = scmp.ne.s32.totalorder %s17_s10, %s75_s11  ;;  %p81_p2 = scmp.lt.s32.totalorder %s75_s11, %s75_s11 }
   0x6   :  { %p82_p3 = por %p81_p2, %p80_p1 }
   0x8   :  { %p83_p4 = pnand %p82_p3, %p76_p0 }
   0xa   :  { %86 = shalt.err (!%p83_p4)
}
   0xb   :  { %19 = dma.hbm_to_vmem [thread:$0]  %s138_s0, 128, %s17_s10, [#allocation3]  }
   0xc   :  { %107 = dma.done.wait [#allocation3], 128  }
   0xd   :  { %108 = vsyncadd [#allocation3], 4294967168  ;;  %v23_v0 = vld [vmem:[#allocation2] sm:$0xff]  ;;  %v112_v9 = vmov -0.6666667   ;;  %s113_s0 = smov [#allocation5]  }
   0xe   :  { %v26_v1 = vmul.f32 0.99, %v23_v0  ;;  %v24_v4 = vand.u32 2147483647, %v23_v0  ;;  %vm29_vm1 = vcmp.gt.f32.partialorder %v23_v0, 0.0  ;;  %s49_s14 = sshll.u32 %s113_s0, 4  ;;  %s50_s14 = int_to_ptr.vmem [resolvable:$true] %s49_s14 }
   0xf   :  { %v30_v10 = vsel %vm29_vm1, 0.6666667, %v112_v9  ;;  %s87_s15 = scalar_lea.vmem %s50_s14, 128  ;;  %p92_p6 = scmp.lt.s32.totalorder %s50_s14, %s50_s14 }
  0x10   :  { %v27_v2 = vmul.f32 %v26_v1, %v23_v0  ;;  %vm25_vm0 = vcmp.gt.f32.partialorder %v24_v4, 1.0  ;;  %v31_v11 = vsub.f32 %v23_v0, %v30_v10  ;;  %p88_p5 = scmp.ne.s32.totalorder %s50_s14, %s87_s15  ;;  %p93_p7 = scmp.lt.s32.totalorder %s87_s15, %s87_s15 }
  0x12   :  { %v28_v3 = vadd.f32 0.01, %v27_v2  ;;  %p94_p8 = por %p93_p7, %p92_p6 }
  0x14   :  { %65 = vlog2.f32 %v28_v3  ;;  %v32_v8 = vmul.f32 %v28_v3, %v23_v0  ;;  %p95_p9 = pnand %p94_p8, %p88_p5 }
  0x16   :  { %v33_v12 = vmul.f32 0.33333334, %v32_v8 }
  0x18   :  { %v34_v13 = vsel %vm25_vm0, %v31_v11, %v33_v12 }
  0x19   :  { %38 = vst [vmem:[#allocation5] sm:$0xff] %v34_v13 }
  0x21   :  { %v66_v5 = vpop.eup %65 }
  0x22   :  { %v36_v6 = vmul.f32 0.6931472, %v66_v5 }
  0x24   :  { %v37_v7 = vsel %vm25_vm0, 0.0, %v36_v6 }
  0x25   :  { %39 = vadd.xlane.f32.xlu0 %v37_v7 }
  0x26   :  { %98 = shalt.err (!%p95_p9)
}
  0x27   :  { %52 = dma.vmem_to_hbm [thread:$0]  %s50_s14, 128, %s139_s1, [#allocation4]   ;;  %vm41_vm2 = vcmask 7168  }
  0xae   :  { %v40_v14 = vpop.xlane.xlu0 %39 }
  0xaf   :  { %42 = vst.msk [vmem:[%s140_s2] sm:$0xff] %vm41_vm2, %v40_v14 }
  0xb0   :  { %109 = dma.done.wait [#allocation4], 128  }
  0xb1   :  { %110 = vsyncadd [#allocation4], 4294967168 }
  0xb2   :  { %60 = vsyncpa [#allocation3], 1 }
  0xb3   :  { %61 = vsyncpa [#allocation4], 1 }

</bundles_post_ra>
